<compile_context>
chip_gen: v7x
topology: tpu7x:2x2x1
jax: 0.10.0
libtpu: 0.0.40
codegen_flags: <defaults>
</compile_context>

<pallas_src>
import jax
import jax.numpy as jnp
import numpy as np
from jax.experimental import pallas as pl
from jax.experimental.pallas import tpu as pltpu


# ----------------------------------------------------------------------------
# Deterministic schedule construction (parameter setup -> plain numpy glue)
# ----------------------------------------------------------------------------
def cosine_beta_schedule_discrete(timesteps, s=0.008):
    """Cosine schedule (Nichol & Dhariwal), discrete form. Returns len timesteps+1."""
    steps = timesteps + 2
    x = np.linspace(0, steps, steps)
    alphas_cumprod = np.cos(0.5 * np.pi * ((x / steps) + s) / (1 + s)) ** 2
    alphas_cumprod = alphas_cumprod / alphas_cumprod[0]
    alphas = alphas_cumprod[1:] / alphas_cumprod[:-1]
    betas = 1.0 - alphas
    return betas.squeeze()


# ----------------------------------------------------------------------------
# Pallas kernel: t -> clamp(round(t * scale)) -> one-hot lookup of BOTH tables
# ----------------------------------------------------------------------------
def _beta_abar_lookup_kernel(scalars_ref, t_ref, tbl_ref, out_ref):
    # scalars_ref: (2,)       f32 SMEM  [scale, max_index]
    # t_ref:       (TB, 1)    f32 VMEM
    # tbl_ref:     (2, T_pad) f32 VMEM  row 0 = betas, row 1 = alphas_bar
    # out_ref:     (TB, 2)    f32 VMEM  col 0 = beta(t), col 1 = alpha_bar(t)
    scale = scalars_ref[0]
    max_idx_f = scalars_ref[1]

    t = t_ref[...]                                                   # (TB, 1)
    # Clamp in float so negative / too-large t never falls off the table (returns
    # betas[0] / betas[-1] instead of a silent 0.0).  Index stays float32 (exact for
    # values < 2^24) — no per-element int32 round-trip.
    idx_f = jnp.clip(jnp.round(t * scale), 0.0, max_idx_f)           # (TB, 1)

    t_pad = tbl_ref.shape[1]
    # Tiny grid-invariant float lane iota (int iota -> f32 convert once, (1, T_pad)).
    lane_f = jax.lax.broadcasted_iota(jnp.int32, (1, t_pad), 1).astype(jnp.float32)
    onehot = lane_f == idx_f                                         # (TB, T_pad) via bcast

    tbl = tbl_ref[...]                                               # (2, T_pad)
    beta = jnp.sum(jnp.where(onehot, tbl[0:1, :], 0.0),
                   axis=-1, keepdims=True)                           # (TB, 1)
    abar = jnp.sum(jnp.where(onehot, tbl[1:2, :], 0.0),
                   axis=-1, keepdims=True)                           # (TB, 1)
    out_ref[...] = jnp.concatenate([beta, abar], axis=-1)            # (TB, 2)


_SINGLE_BLOCK_MAX_ROWS = 1024   # below this, one block (launch-dominated regardless)
_MAX_BLOCK_ROWS = 2048


def _round_up(x, m):
    return -(-x // m) * m


def _pallas_table_lookup(t2d, tables2d, scalars):
    """t2d: (N, 1) f32, tables2d: (2, T_pad) f32, scalars: (2,) f32 -> (N, 2) f32."""
    n_rows = t2d.shape[0]
    n_tables, t_pad = tables2d.shape

    if n_rows <= _SINGLE_BLOCK_MAX_ROWS:
        # Single block equal to the full array -> exempt from the (8,128) rule; no pad.
        tb = n_rows
        grid = (1,)
        tbl_spec = pl.BlockSpec((n_tables, t_pad), lambda i: (0, 0))
    else:
        # Large-N path: >= 2 programs so v7x's two TensorCores both get work
        # (dimension_semantics=('parallel',) does nothing at grid=(1,)).
        tb = min(_MAX_BLOCK_ROWS, max(8, _round_up(pl.cdiv(n_rows, 2), 8)))
        grid = (pl.cdiv(n_rows, tb),)
        # Table block is grid-invariant: single buffer, no redundant per-block DMA.
        tbl_spec = pl.BlockSpec((n_tables, t_pad), lambda i: (0, 0),
                                pipeline_mode=pl.Buffered(1))

    return pl.pallas_call(
        _beta_abar_lookup_kernel,
        out_shape=jax.ShapeDtypeStruct((n_rows, n_tables), jnp.float32),
        grid=grid,
        in_specs=[
            pl.BlockSpec(memory_space=pltpu.MemorySpace.SMEM),        # scale / max_idx
            pl.BlockSpec((tb, 1), lambda i: (i, 0)),                  # t rows
            tbl_spec,                                                 # stacked tables
        ],
        out_specs=pl.BlockSpec((tb, n_tables), lambda i: (i, 0)),
        compiler_params=pltpu.CompilerParams(
            dimension_semantics=("parallel",),                        # free at grid=(1,)
        ),
    )(scalars, t2d, tables2d)


# ----------------------------------------------------------------------------
# Module-equivalent wrapper
# ----------------------------------------------------------------------------
class PredefinedNoiseScheduleDiscrete:
    """JAX/Pallas port of the PyTorch PredefinedNoiseScheduleDiscrete (forward only)."""

    def __init__(self, noise_schedule, timesteps):
        self.timesteps = timesteps
        if noise_schedule == "cosine":
            betas = cosine_beta_schedule_discrete(timesteps)          # (timesteps + 1,)
        else:
            # TODO(synk): 'custom' schedule needs dataset edge-count statistics; not ported.
            raise NotImplementedError(noise_schedule)
        betas = np.asarray(betas, dtype=np.float32)
        self.betas = jnp.asarray(betas)                               # (timesteps + 1,)

        # Buffers kept for parity with the PyTorch module.
        alphas = 1.0 - np.clip(betas, 0.0, 0.9999)
        self.alphas = jnp.asarray(alphas)
        alphas_bar = np.exp(np.cumsum(np.log(alphas))).astype(np.float32)
        self.alphas_bar = jnp.asarray(alphas_bar)

        # Both tables stacked into one lane-padded (2, T_pad) operand so a single
        # kernel launch can return beta(t) AND alpha_bar(t).
        n = betas.shape[0]
        t_pad = _round_up(n, 128)
        stacked = np.zeros((2, t_pad), dtype=np.float32)
        stacked[0, :n] = betas
        stacked[1, :n] = alphas_bar
        self._tables = jnp.asarray(stacked)                           # (2, T_pad)
        self._n_entries = n

    # -- shared preprocessing -------------------------------------------------
    def _prep(self, t_normalized, t_int):
        assert int(t_normalized is None) + int(t_int is None) == 1
        if t_int is None:
            t = jnp.asarray(t_normalized, jnp.float32)
            scale = float(self.timesteps)
        else:
            # Exact through float32 for |t_int| < 2^24 — always true for diffusion steps.
            t = jnp.asarray(t_int, jnp.float32)
            scale = 1.0
        return t, scale

    # -- fused Pallas lookup (one launch -> both values) ----------------------
    def _lookup_both(self, t_normalized=None, t_int=None):
        t, scale = self._prep(t_normalized, t_int)
        orig_shape = t.shape
        flat = t.reshape(-1, 1)                                       # (N, 1), no row pad
        scalars = jnp.array([scale, float(self._n_entries - 1)], dtype=jnp.float32)
        both = _pallas_table_lookup(flat, self._tables, scalars)      # (N, 2)
        beta = both[:, 0].reshape(orig_shape)
        abar = both[:, 1].reshape(orig_shape)
        return beta, abar

    # Recommended production path (fuse into the consumer / plain XLA gather) —
    # used here as the correctness reference for the kernel.
    def _lookup_both_xla(self, t_normalized=None, t_int=None):
        t, scale = self._prep(t_normalized, t_int)
        idx = jnp.clip(jnp.round(t * scale), 0.0,
                       float(self._n_entries - 1)).astype(jnp.int32)
        return self.betas[idx], self.alphas_bar[idx]

    # -- PyTorch-equivalent API ----------------------------------------------
    def __call__(self, t_normalized=None, t_int=None):
        return self._lookup_both(t_normalized, t_int)[0]

    def get_alpha_bar(self, t_normalized=None, t_int=None):
        return self._lookup_both(t_normalized, t_int)[1]

    def get_beta_and_alpha_bar(self, t_normalized=None, t_int=None):
        """Fused lookup: one pallas_call returns (beta(t), alpha_bar(t))."""
        return self._lookup_both(t_normalized, t_int)


# ----------------------------------------------------------------------------
# Demo / self-check
# ----------------------------------------------------------------------------
if __name__ == "__main__":
    timesteps = 500
    sched = PredefinedNoiseScheduleDiscrete("cosine", timesteps)

    key = jax.random.PRNGKey(0)
    batch = 8
    t_normalized = jax.random.uniform(key, (batch, 1), dtype=jnp.float32)  # in [0, 1)

    # Fused kernel path (one launch -> beta AND alpha_bar), t_normalized branch.
    beta, abar = sched.get_beta_and_alpha_bar(t_normalized=t_normalized)
    beta = jax.block_until_ready(beta)
    abar = jax.block_until_ready(abar)

    # Pure-numpy reference.
    t_np = np.asarray(t_normalized)
    idx = np.round(t_np * np.float32(timesteps)).astype(np.int64)[..., 0]
    ref_beta = np.asarray(sched.betas)[idx][..., None]
    ref_abar = np.asarray(sched.alphas_bar)[idx][..., None]
    assert beta.shape == t_normalized.shape and beta.dtype == jnp.float32
    np.testing.assert_allclose(np.asarray(beta), ref_beta, rtol=1e-6, atol=1e-7)
    np.testing.assert_allclose(np.asarray(abar), ref_abar, rtol=1e-6, atol=1e-7)

    # Cross-check against the XLA-gather reference path (the recommended fused path).
    rb, ra = sched._lookup_both_xla(t_normalized=t_normalized)
    np.testing.assert_allclose(np.asarray(beta), np.asarray(rb), rtol=1e-6, atol=1e-7)
    np.testing.assert_allclose(np.asarray(abar), np.asarray(ra), rtol=1e-6, atol=1e-7)

    # Module-parity API: __call__ (forward) and get_alpha_bar on the t_int branch.
    t_int = jnp.arange(batch, dtype=jnp.int32).reshape(batch, 1) * 37
    out_int = jax.block_until_ready(sched(t_int=t_int))
    ref_int = np.asarray(sched.betas)[np.asarray(t_int)[..., 0]][..., None]
    np.testing.assert_allclose(np.asarray(out_int), ref_int, rtol=1e-6, atol=1e-7)

    ab_int = jax.block_until_ready(sched.get_alpha_bar(t_int=t_int))
    ref_ab = np.asarray(sched.alphas_bar)[np.asarray(t_int)[..., 0]][..., None]
    np.testing.assert_allclose(np.asarray(ab_int), ref_ab, rtol=1e-6, atol=1e-7)

    # Edge values of t_normalized map to indices 0 / timesteps (in-kernel clamp keeps
    # anything beyond that on the table ends).
    t_edge = jnp.array([[0.0], [1.0]], dtype=jnp.float32)
    out_edge = jax.block_until_ready(sched(t_normalized=t_edge))
    ref_edge = np.asarray(sched.betas)[np.array([0, timesteps])][..., None]
    np.testing.assert_allclose(np.asarray(out_edge), ref_edge, rtol=1e-6, atol=1e-7)

    print("KERNEL_OK")
</pallas_src>

<mosaic_0001>
module attributes {stable_mosaic.version = 11 : i64} {
  func.func @_beta_abar_lookup_kernel(%arg0: i32, %arg1: memref<2xf32, #tpu.memory_space<smem>>, %arg2: memref<8x1xf32, #tpu.memory_space<vmem>>, %arg3: memref<2x512xf32, #tpu.memory_space<vmem>>, %arg4: memref<8x2xf32, #tpu.memory_space<vmem>>) attributes {dimension_semantics = [#tpu.dimension_semantics<parallel>], iteration_bounds = array<i64: 1>, scalar_prefetch = 0 : i64, scratch_operands = 0 : i64, tpu.core_type = #tpu.core_type<tc>, window_params = [{transform_indices = @transform_0, window_bounds = array<i64: 2>}, {transform_indices = @transform_1, window_bounds = array<i64: 8, 1>}, {pipeline_mode = #tpu.pipeline_mode<synchronous>, transform_indices = @transform_2, window_bounds = array<i64: 2, 512>}, {transform_indices = @transform_3, window_bounds = array<i64: 8, 2>}]} {
    %c0 = arith.constant 0 : index
    %0 = memref.load %arg1[%c0] : memref<2xf32, #tpu.memory_space<smem>>
    %c1 = arith.constant 1 : index
    %1 = memref.load %arg1[%c1] : memref<2xf32, #tpu.memory_space<smem>>
    %c0_0 = arith.constant 0 : index
    %c0_1 = arith.constant 0 : index
    %2 = vector.load %arg2[%c0_0, %c0_1] : memref<8x1xf32, #tpu.memory_space<vmem>>, vector<8x1xf32>
    %3 = vector.broadcast %0 : f32 to vector<8x1xf32>
    %4 = arith.mulf %2, %3 : vector<8x1xf32>
    %5 = math.roundeven %4 : vector<8x1xf32>
    %cst = arith.constant 0.000000e+00 : f32
    %6 = vector.broadcast %cst : f32 to vector<8x1xf32>
    %7 = arith.maximumf %6, %5 : vector<8x1xf32>
    %8 = vector.broadcast %1 : f32 to vector<8x1xf32>
    %9 = arith.minimumf %8, %7 : vector<8x1xf32>
    %10 = tpu.iota {dimensions = array<i32: 1>} : vector<1x512xi32>
    %11 = arith.sitofp %10 : vector<1x512xi32> to vector<1x512xf32>
    %12 = vector.broadcast %11 : vector<1x512xf32> to vector<8x512xf32>
    %13 = vector.broadcast %9 : vector<8x1xf32> to vector<8x512xf32>
    %14 = arith.cmpf oeq, %12, %13 : vector<8x512xf32>
    %c0_2 = arith.constant 0 : index
    %c0_3 = arith.constant 0 : index
    %15 = vector.load %arg3[%c0_2, %c0_3] : memref<2x512xf32, #tpu.memory_space<vmem>>, vector<2x512xf32>
    %16 = vector.extract_strided_slice %15 {offsets = [0, 0], sizes = [1, 512], strides = [1, 1]} : vector<2x512xf32> to vector<1x512xf32>
    %cst_4 = arith.constant 0.000000e+00 : f32
    %17 = vector.shape_cast %16 : vector<1x512xf32> to vector<1x512xf32>
    %18 = vector.broadcast %17 : vector<1x512xf32> to vector<8x512xf32>
    %19 = vector.broadcast %cst_4 : f32 to vector<8x512xf32>
    %20 = arith.select %14, %18, %19 : vector<8x512xi1>, vector<8x512xf32>
    %cst_5 = arith.constant dense<0.000000e+00> : vector<8xf32>
    %21 = vector.multi_reduction <add>, %20, %cst_5 [1] : vector<8x512xf32> to vector<8xf32>
    %22 = vector.shape_cast %21 : vector<8xf32> to vector<8x1xf32>
    %23 = vector.extract_strided_slice %15 {offsets = [1, 0], sizes = [1, 512], strides = [1, 1]} : vector<2x512xf32> to vector<1x512xf32>
    %cst_6 = arith.constant 0.000000e+00 : f32
    %24 = vector.shape_cast %23 : vector<1x512xf32> to vector<1x512xf32>
    %25 = vector.broadcast %24 : vector<1x512xf32> to vector<8x512xf32>
    %26 = vector.broadcast %cst_6 : f32 to vector<8x512xf32>
    %27 = arith.select %14, %25, %26 : vector<8x512xi1>, vector<8x512xf32>
    %cst_7 = arith.constant dense<0.000000e+00> : vector<8xf32>
    %28 = vector.multi_reduction <add>, %27, %cst_7 [1] : vector<8x512xf32> to vector<8xf32>
    %29 = vector.shape_cast %28 : vector<8xf32> to vector<8x1xf32>
    %30 = tpu.concatenate %22, %29 in 1 : vector<8x1xf32>, vector<8x1xf32> -> vector<8x2xf32>
    %c0_8 = arith.constant 0 : index
    %c0_9 = arith.constant 0 : index
    %31 = vector.load %arg4[%c0_8, %c0_9] : memref<8x2xf32, #tpu.memory_space<vmem>>, vector<8x2xf32>
    tpu.vector_store %arg4[%c0_8, %c0_9], %30 {strides = array<i32>} : memref<8x2xf32, #tpu.memory_space<vmem>>, vector<8x2xf32>,
    return
  }
  func.func @transform_0(%arg0: i32) -> i32 {
    %c0_i32 = arith.constant 0 : i32
    %c0_i32_0 = arith.constant 0 : i32
    return %c0_i32 : i32
  }
  func.func @transform_1(%arg0: i32) -> (i32, i32) {
    %c0_i32 = arith.constant 0 : i32
    %c0_i32_0 = arith.constant 0 : i32
    return %arg0, %c0_i32 : i32, i32
  }
  func.func @transform_2(%arg0: i32) -> (i32, i32) {
    %c0_i32 = arith.constant 0 : i32
    %c0_i32_0 = arith.constant 0 : i32
    %c0_i32_1 = arith.constant 0 : i32
    return %c0_i32, %c0_i32_0 : i32, i32
  }
  func.func @transform_3(%arg0: i32) -> (i32, i32) {
    %c0_i32 = arith.constant 0 : i32
    %c0_i32_0 = arith.constant 0 : i32
    return %arg0, %c0_i32 : i32, i32
  }
}

</mosaic_0001>

<bundles_post_ra>
// kernel: tpu_custom_call.1
= control target key start
LH: loop header
LB: loop body
LE: loop exit
PB: predicated region body
PF: predicated region fallthrough
CT: control target
= control target key end

     0   :  { %8 = vsyncpa [#allocation3], 0  ;;  %s208_s0 = inlined_call_operand.vmem [shape: f32[2], index: 0, kind: input, shape index: {}]   ;;  %s209_s1 = inlined_call_operand.vmem [shape: f32[8,1], index: 1, kind: input, shape index: {}]   ;;  %s210_s2 = inlined_call_operand.vmem [shape: f32[2,512], index: 2, kind: input, shape index: {}]   ;;  %s211_s3 = inlined_call_operand.vmem [shape: f32[8,2], index: 3, kind: output, shape index: {}]  }
   0x1   :  { %s15_s14 = sshll.u32 %s208_s0, 4  ;;  %s16_s14 = int_to_ptr.vmem [resolvable:$true] %s15_s14 }
   0x2   :  { %s160_s15 = scalar_lea.vmem %s16_s14, 16  ;;  %p165_p1 = scmp.lt.s32.totalorder %s16_s14, %s16_s14 }
   0x3   :  { %p161_p0 = scmp.ne.s32.totalorder %s16_s14, %s160_s15  ;;  %p166_p2 = scmp.lt.s32.totalorder %s160_s15, %s160_s15 }
   0x5   :  { %p167_p3 = por %p166_p2, %p165_p1 }
   0x7   :  { %p168_p4 = pnand %p167_p3, %p161_p0 }
   0x9   :  { %171 = shalt.err (!%p168_p4)
}
   0xa   :  { %s174_s16 = smov [#allocation2]  }
   0xb   :  { %18 = dma.vmem_to_smem %s16_s14, 16, %s174_s16, [#allocation3]  }
   0xc   :  { %172 = dma.done.wait [#allocation3], 16  }
   0xd   :  { %173 = vsyncadd [#allocation3], 4294967280 }
   0xe   :  { %26 = sfence }
   0xf   :  { %s27_s17 = sld [smem:[#allocation2]]  ;;  %v175_v0 = vmov 0   ;;  %s155_s18 = sld [smem:[#allocation2 + $0x1]]  ;;  %v29_v1 = vld [vmem:[%s209_s1] sm:$0xff]  ;;  %v36_v8 = vlaneseq  ;;  %vm146_vm4 = vcmask 7168   ;;  %vm148_vm5 = vcmask 15360  }
  0x10   :  { %159 = vset.pattern.permute.xlu0 %v175_v0  ;;  %v54_v13 = vld [vmem:[%s210_s2] sm:$0xff] }
  0x11   :  { %v57_v9 = vshrl.u32 %v36_v8, 7  ;;  %v37_v10 = vand.u32 127, %v36_v8 }
  0x13   :  { %v103_v11 = vsub.s32 1, %v57_v9  ;;  %v107_v12 = vsub.s32 3, %v57_v9  ;;  %v58_v14 = vsub.s32 0, %v57_v9  ;;  %v62_v15 = vsub.s32 2, %v57_v9 }
  0x14   :  { %v111_v16 = vsub.s32 5, %v57_v9  ;;  %v38_v17 = vadd.s32 128, %v37_v10  ;;  %v39_v18 = vadd.s32 256, %v37_v10  ;;  %v66_v19 = vsub.s32 4, %v57_v9 }
  0x15   :  { %v30_v2 = vstv %s27_s17  ;;  %v34_v5 = vstv %s155_s18  ;;  %v104_v20 = vrot.slane %v54_v13, %v103_v11  ;;  %v108_v21 = vrot.slane %v54_v13, %v107_v12 }
  0x16   :  { %v31_v3 = vmul.f32 %v30_v2, %v29_v1  ;;  %v115_v22 = vsub.s32 7, %v57_v9  ;;  %v70_v23 = vsub.s32 6, %v57_v9  ;;  %v40_v24 = vadd.s32 384, %v37_v10 }
  0x17   :  { %v59_v25 = vrot.slane %v54_v13, %v58_v14  ;;  %v63_v26 = vrot.slane %v54_v13, %v62_v15  ;;  %v112_v27 = vrot.slane %v54_v13, %v111_v16  ;;  %v41_v28 = vcvt.s32.f32 %v37_v10 }
  0x18   :  { %v156_v4 = vround.rtne.f32 %v31_v3  ;;  %v42_v29 = vcvt.s32.f32 %v38_v17  ;;  %v43_v30 = vcvt.s32.f32 %v39_v18  ;;  %v67_v31 = vrot.slane %v54_v13, %v66_v19 }
  0x19   :  { %v116_v32 = vrot.slane %v54_v13, %v115_v22  ;;  %v124_v33 = vrot.slane %v104_v20, %v103_v11  ;;  %v128_v34 = vrot.slane %v108_v21, %v103_v11  ;;  %v71_v35 = vrot.slane %v54_v13, %v70_v23 }
  0x1a   :  { %v33_v6 = vmax.f32 %v156_v4, 0.0  ;;  %v44_v36 = vcvt.s32.f32 %v40_v24  ;;  %v79_v37 = vrot.slane %v59_v25, %v58_v14  ;;  %v83_v38 = vrot.slane %v63_v26, %v58_v14 }
  0x1b   :  { %v132_v40 = vrot.slane %v112_v27, %v103_v11  ;;  %v87_v41 = vrot.slane %v67_v31, %v58_v14  ;;  %v136_v42 = vrot.slane %v116_v32, %v103_v11  ;;  %v91_v45 = vrot.slane %v71_v35, %v58_v14 }
  0x1c   :  { %v35_v7 = vmin.f32 %v34_v5, %v33_v6 }
  0x1e   :  { %47 = vperm.xlu0 %159, %v35_v7  }
  0x9d   :  { %v48_v39 = vpop.permute.xlu0 %47 }
  0x9e   :  { %vm50_vm0 = vcmp.eq.f32.partialorder %v41_v28, %v48_v39  ;;  %vm51_vm1 = vcmp.eq.f32.partialorder %v42_v29, %v48_v39  ;;  %vm52_vm2 = vcmp.eq.f32.partialorder %v43_v30, %v48_v39  ;;  %vm53_vm3 = vcmp.eq.f32.partialorder %v44_v36, %v48_v39 }
  0x9f   :  { %v137_v43 = vsel %vm50_vm0, %v124_v33, 0.0  ;;  %v138_v44 = vsel %vm51_vm1, %v128_v34, 0.0  ;;  %v92_v47 = vsel %vm50_vm0, %v79_v37, 0.0  ;;  %v93_v48 = vsel %vm51_vm1, %v83_v38, 0.0 }
  0xa0   :  { %v141_v46 = vadd.f32 %v138_v44, %v137_v43  ;;  %v139_v49 = vsel %vm52_vm2, %v132_v40, 0.0  ;;  %v96_v50 = vadd.f32 %v93_v48, %v92_v47  ;;  %v94_v52 = vsel %vm52_vm2, %v87_v41, 0.0 }
  0xa1   :  { %v140_v53 = vsel %vm53_vm3, %v136_v42, 0.0  ;;  %v95_v56 = vsel %vm53_vm3, %v91_v45, 0.0 }
  0xa2   :  { %v142_v51 = vadd.f32 %v141_v46, %v139_v49  ;;  %v97_v54 = vadd.f32 %v96_v50, %v94_v52 }
  0xa4   :  { %v143_v55 = vadd.f32 %v142_v51, %v140_v53  ;;  %v98_v57 = vadd.f32 %v97_v54, %v95_v56 }
  0xa6   :  { %144 = vadd.xlane.f32.xlu1 %v143_v55  ;;  %99 = vadd.xlane.f32.xlu0 %v98_v57 }
 0x133   :  { %v145_v58 = vpop.xlane.xlu1 %144  ;;  %v100_v59 = vpop.xlane.xlu0 %99 }
 0x134   :  { %v147_v60 = vsel %vm146_vm4, %v100_v59, %v145_v58 }
 0x135   :  { %149 = vst.msk [vmem:[%s211_s3] sm:$0xff] %vm148_vm5, %v147_v60 }
 0x136   :  { %154 = vsyncpa [#allocation3], 1 }

</bundles_post_ra>
